<compile_context>
chip_gen: v6e
topology: v6e:2x2x1
jax: 0.10.0
libtpu: 0.0.40
codegen_flags: <defaults>
</compile_context>

<pallas_src>
import math
from functools import partial

import jax
import jax.numpy as jnp
from jax.experimental import pallas as pl
from jax.experimental.pallas import tpu as pltpu


def _lora_kernel(x_ref, wa_ref, wb_ref, b_ref, o_ref, t_ref, *, scaling):
    # First GEMM only once per row tile: cache t = (x @ WA) * s in VMEM.
    @pl.when(pl.program_id(1) == 0)
    def _():
        t_ref[...] = jnp.dot(
            x_ref[...], wa_ref[...],
            preferred_element_type=jnp.float32) * scaling

    # Second GEMM in the weights' native dtype (bf16 stays on the fast MXU
    # path); only the tiny (tile_m, rank) intermediate is cast per step.
    t = t_ref[...].astype(wb_ref.dtype)
    y = jnp.dot(t, wb_ref[...], preferred_element_type=jnp.float32)
    o_ref[...] = (y + b_ref[...].astype(jnp.float32)).astype(o_ref.dtype)


def _round_up(a, m):
    return pl.cdiv(a, m) * m


def lora_linear(x, WA, WB, b, *, tile_m=512, tile_n=512,
                vmem_budget_bytes=48 * 1024 * 1024):
    """LoRA linear forward: y = ((x @ WA) * (1/rank)) @ WB + b."""
    orig_shape = x.shape
    in_features = orig_shape[-1]
    rank, out_features = WB.shape
    assert WA.shape == (in_features, rank)
    assert b.shape == (out_features,)
    assert tile_n % 128 == 0, "tile_n must be a multiple of 128"

    M = 1
    for d in orig_shape[:-1]:
        M *= d
    x2d = x.reshape(M, in_features)
    b2 = b.reshape(1, out_features)
    scaling = 1.0 / rank

    # ---- Row (M) tiling: multiples of 8, never padding / copying x --------
    tile_m_req = _round_up(max(tile_m, 8), 8)
    if M <= tile_m_req:
        tile_m_eff = M                           # single full-dim row tile
        if M >= 16:
            # v7x megacore: give the "parallel" m axis >= 2 tiles.
            tile_m_eff = _round_up(pl.cdiv(M, 2), 8)
    else:
        tile_m_eff = tile_m_req

    # ---- Column (out_features) tiling: lane-dense 128 multiples -----------
    if out_features <= 128:
        tile_n_eff = out_features                # single full-dim tile
    else:
        tile_n_eff = min(tile_n, (out_features // 128) * 128)

    # ---- Fit the double-buffered working set into the VMEM budget ---------
    x_isz = jnp.dtype(x.dtype).itemsize
    w_isz = jnp.dtype(WB.dtype).itemsize

    def vmem_bytes(tm, tn):
        return (2 * tm * in_features * x_isz     # x tiles (double-buffered)
                + 2 * tm * tn * x_isz            # output tiles
                + 2 * in_features * rank * w_isz # WA (resident)
                + 2 * rank * tn * w_isz          # WB tiles
                + 2 * tn * w_isz                 # bias tiles
                + tm * rank * 4)                 # fp32 t scratch

    while (vmem_bytes(tile_m_eff, tile_n_eff) > vmem_budget_bytes
           and tile_m_eff > 64):
        tile_m_eff = max(64, _round_up(tile_m_eff // 2, 8))
    while (vmem_bytes(tile_m_eff, tile_n_eff) > vmem_budget_bytes
           and tile_n_eff > 128):
        tile_n_eff = max(128, (tile_n_eff // 2 // 128) * 128)
    # TODO(synk): for very large in_features, add a K grid axis over
    # in_features (accumulating into the (tile_m, rank) scratch) instead of
    # loading full-width x blocks.

    grid = (pl.cdiv(M, tile_m_eff), pl.cdiv(out_features, tile_n_eff))

    # Advisory cost hint (low-rank FLOPs; the kernel is HBM-bound).
    cost = pl.CostEstimate(
        flops=int(2 * M * rank * in_features + 2 * M * rank * out_features),
        transcendentals=0,
        bytes_accessed=int(
            M * in_features * x_isz + M * out_features * x_isz
            + WA.size * jnp.dtype(WA.dtype).itemsize
            + WB.size * w_isz + b.size * jnp.dtype(b.dtype).itemsize),
    )

    out = pl.pallas_call(
        partial(_lora_kernel, scaling=scaling),
        out_shape=jax.ShapeDtypeStruct((M, out_features), x.dtype),
        grid_spec=pltpu.PrefetchScalarGridSpec(
            num_scalar_prefetch=0,
            grid=grid,
            in_specs=[
                # x tile: changes along the m axis only -> not re-streamed
                # across the inner j sweep.
                pl.BlockSpec((tile_m_eff, in_features), lambda i, j: (i, 0)),
                # WA: constant index_map -> resident.
                pl.BlockSpec((in_features, rank), lambda i, j: (0, 0)),
                # WB / bias: tiled along out_features only.
                pl.BlockSpec((rank, tile_n_eff), lambda i, j: (0, j)),
                pl.BlockSpec((1, tile_n_eff), lambda i, j: (0, j)),
            ],
            out_specs=pl.BlockSpec((tile_m_eff, tile_n_eff),
                                   lambda i, j: (i, j)),
            scratch_shapes=[pltpu.VMEM((tile_m_eff, rank), jnp.float32)],
        ),
        compiler_params=pltpu.CompilerParams(
            # The t scratch is filled at j == 0 and reused for j > 0, so the
            # n axis must NOT be megacore-sharded -> "arbitrary".
            dimension_semantics=("parallel", "arbitrary"),
            vmem_limit_bytes=vmem_budget_bytes,
        ),
        cost_estimate=cost,
    )(x2d, WA, WB, b2)

    return out.reshape(*orig_shape[:-1], out_features)


def _reference(x2d, WA, WB, b, rank):
    # Dense reference matching the PyTorch forward exactly (in fp32).
    W = (WA.astype(jnp.float32) @ WB.astype(jnp.float32)) * (1.0 / rank)
    return x2d.astype(jnp.float32) @ W + b.astype(jnp.float32)


if __name__ == "__main__":
    key = jax.random.PRNGKey(0)
    kx, ka, kb, kbias, k2 = jax.random.split(key, 5)

    # ---- 1) Small shapes matching the module's intent ----------------------
    batch, seq = 2, 8
    in_f, out_f, rank = 32, 32, 4
    bound = 1.0 / math.sqrt(rank)
    WA = jax.random.uniform(ka, (in_f, rank), jnp.float32, -bound, bound)
    WB = 0.02 * jax.random.normal(kb, (rank, out_f), jnp.float32)
    b = 0.1 * jax.random.normal(kbias, (out_f,), jnp.float32)
    x = jax.random.normal(kx, (batch, seq, in_f), jnp.float32)

    y = jax.block_until_ready(lora_linear(x, WA, WB, b))
    y_ref = _reference(x.reshape(-1, in_f), WA, WB, b, rank)
    assert jnp.allclose(y.reshape(-1, out_f), y_ref, atol=1e-4, rtol=1e-4), \
        "mismatch vs reference (small)"

    # ---- 2) Multi out_features tiles + partial row tile --------------------
    ka2, kb2, kbias2, kx2, k3 = jax.random.split(k2, 5)
    in2, out2, r2, M2 = 128, 384, 8, 300
    WA2 = jax.random.uniform(ka2, (in2, r2), jnp.float32,
                             -1.0 / math.sqrt(r2), 1.0 / math.sqrt(r2))
    WB2 = 0.02 * jax.random.normal(kb2, (r2, out2), jnp.float32)
    b2_ = 0.1 * jax.random.normal(kbias2, (out2,), jnp.float32)
    x2 = jax.random.normal(kx2, (M2, in2), jnp.float32)
    y2 = jax.block_until_ready(lora_linear(x2, WA2, WB2, b2_,
                                           tile_m=256, tile_n=128))
    assert jnp.allclose(y2, _reference(x2, WA2, WB2, b2_, r2),
                        atol=1e-4, rtol=1e-4), "mismatch vs reference (tiled)"

    # ---- 3) Non-128-aligned out_features (partial lane block) --------------
    ka3, kb3, kbias3, kx3, k4 = jax.random.split(k3, 5)
    in3, out3, r3, M3 = 64, 200, 4, 50
    WA3 = jax.random.uniform(ka3, (in3, r3), jnp.float32, -0.5, 0.5)
    WB3 = 0.02 * jax.random.normal(kb3, (r3, out3), jnp.float32)
    b3_ = 0.1 * jax.random.normal(kbias3, (out3,), jnp.float32)
    x3 = jax.random.normal(kx3, (M3, in3), jnp.float32)
    y3 = jax.block_until_ready(lora_linear(x3, WA3, WB3, b3_))
    assert jnp.allclose(y3, _reference(x3, WA3, WB3, b3_, r3),
                        atol=1e-4, rtol=1e-4), "mismatch vs reference (ragged)"

    # ---- 4) bf16 activations + weights (fast MXU path) ---------------------
    ka4, kb4, kbias4, kx4 = jax.random.split(k4, 4)
    in4, out4, r4, M4 = 256, 256, 8, 64
    WA4 = jax.random.uniform(ka4, (in4, r4), jnp.float32,
                             -1.0 / math.sqrt(r4),
                             1.0 / math.sqrt(r4)).astype(jnp.bfloat16)
    WB4 = (0.02 * jax.random.normal(kb4, (r4, out4), jnp.float32)
           ).astype(jnp.bfloat16)
    b4_ = (0.1 * jax.random.normal(kbias4, (out4,), jnp.float32)
           ).astype(jnp.bfloat16)
    x4 = jax.random.normal(kx4, (M4, in4), jnp.float32).astype(jnp.bfloat16)
    y4 = jax.block_until_ready(lora_linear(x4, WA4, WB4, b4_))
    y4_ref = _reference(x4, WA4, WB4, b4_, r4)
    assert jnp.allclose(y4.astype(jnp.float32), y4_ref,
                        atol=5e-2, rtol=5e-2), "mismatch vs reference (bf16)"

    print("KERNEL_OK")
</pallas_src>

<mosaic_0001>
module attributes {stable_mosaic.version = 11 : i64} {
  func.func @_lora_kernel(%arg0: i32, %arg1: i32, %arg2: memref<8x32xf32, #tpu.memory_space<vmem>>, %arg3: memref<32x4xf32, #tpu.memory_space<vmem>>, %arg4: memref<4x32xf32, #tpu.memory_space<vmem>>, %arg5: memref<1x32xf32, #tpu.memory_space<vmem>>, %arg6: memref<8x32xf32, #tpu.memory_space<vmem>>, %arg7: memref<8x4xf32, #tpu.memory_space<vmem>>) attributes {dimension_semantics = [#tpu.dimension_semantics<parallel>, #tpu.dimension_semantics<arbitrary>], iteration_bounds = array<i64: 2, 1>, scalar_prefetch = 0 : i64, scratch_operands = 1 : i64, tpu.core_type = #tpu.core_type<tc>, window_params = [{transform_indices = @transform_0, window_bounds = array<i64: 8, 32>}, {pipeline_mode = #tpu.pipeline_mode<synchronous>, transform_indices = @transform_1, window_bounds = array<i64: 32, 4>}, {transform_indices = @transform_2, window_bounds = array<i64: 4, 32>}, {transform_indices = @transform_3, window_bounds = array<i64: 1, 32>}, {transform_indices = @transform_4, window_bounds = array<i64: 8, 32>}]} {
    %c0_i32 = arith.constant 0 : i32
    %0 = arith.cmpi eq, %arg1, %c0_i32 : i32
    %1 = arith.extui %0 : i1 to i32
    %c0_i32_0 = arith.constant 0 : i32
    %2 = arith.cmpi ne, %1, %c0_i32_0 : i32
    scf.if %2 {
      %c0_8 = arith.constant 0 : index
      %c0_9 = arith.constant 0 : index
      %10 = vector.load %arg2[%c0_8, %c0_9] : memref<8x32xf32, #tpu.memory_space<vmem>>, vector<8x32xf32>
      %c0_10 = arith.constant 0 : index
      %c0_11 = arith.constant 0 : index
      %11 = vector.load %arg3[%c0_10, %c0_11] : memref<32x4xf32, #tpu.memory_space<vmem>>, vector<32x4xf32>
      %cst_12 = arith.constant dense<0.000000e+00> : vector<8x4xf32>
      %12 = tpu.matmul %10, %11, %cst_12 {dimension_numbers = #tpu.dot_dimension_numbers<[1], [0], [0], [1], [0, 0, 1, 1], [], []>} : vector<8x32xf32>, vector<32x4xf32>, vector<8x4xf32> -> vector<8x4xf32>
      %cst_13 = arith.constant 2.500000e-01 : f32
      %13 = vector.broadcast %cst_13 : f32 to vector<8x4xf32>
      %14 = arith.mulf %12, %13 : vector<8x4xf32>
      %c0_14 = arith.constant 0 : index
      %c0_15 = arith.constant 0 : index
      %15 = vector.load %arg7[%c0_14, %c0_15] : memref<8x4xf32, #tpu.memory_space<vmem>>, vector<8x4xf32>
      tpu.vector_store %arg7[%c0_14, %c0_15], %14 {strides = array<i32>} : memref<8x4xf32, #tpu.memory_space<vmem>>, vector<8x4xf32>,
    } else {
    }
    %c0 = arith.constant 0 : index
    %c0_1 = arith.constant 0 : index
    %3 = vector.load %arg7[%c0, %c0_1] : memref<8x4xf32, #tpu.memory_space<vmem>>, vector<8x4xf32>
    %c0_2 = arith.constant 0 : index
    %c0_3 = arith.constant 0 : index
    %4 = vector.load %arg4[%c0_2, %c0_3] : memref<4x32xf32, #tpu.memory_space<vmem>>, vector<4x32xf32>
    %cst = arith.constant dense<0.000000e+00> : vector<8x32xf32>
    %5 = tpu.matmul %3, %4, %cst {dimension_numbers = #tpu.dot_dimension_numbers<[1], [0], [0], [1], [0, 0, 1, 1], [], []>} : vector<8x4xf32>, vector<4x32xf32>, vector<8x32xf32> -> vector<8x32xf32>
    %c0_4 = arith.constant 0 : index
    %c0_5 = arith.constant 0 : index
    %6 = vector.load %arg5[%c0_4, %c0_5] : memref<1x32xf32, #tpu.memory_space<vmem>>, vector<1x32xf32>
    %7 = vector.broadcast %6 : vector<1x32xf32> to vector<8x32xf32>
    %8 = arith.addf %5, %7 : vector<8x32xf32>
    %c0_6 = arith.constant 0 : index
    %c0_7 = arith.constant 0 : index
    %9 = vector.load %arg6[%c0_6, %c0_7] : memref<8x32xf32, #tpu.memory_space<vmem>>, vector<8x32xf32>
    tpu.vector_store %arg6[%c0_6, %c0_7], %8 {strides = array<i32>} : memref<8x32xf32, #tpu.memory_space<vmem>>, vector<8x32xf32>,
    return
  }
  func.func @transform_0(%arg0: i32, %arg1: i32) -> (i32, i32) {
    %c0_i32 = arith.constant 0 : i32
    %c0_i32_0 = arith.constant 0 : i32
    return %arg0, %c0_i32 : i32, i32
  }
  func.func @transform_1(%arg0: i32, %arg1: i32) -> (i32, i32) {
    %c0_i32 = arith.constant 0 : i32
    %c0_i32_0 = arith.constant 0 : i32
    %c0_i32_1 = arith.constant 0 : i32
    return %c0_i32, %c0_i32_0 : i32, i32
  }
  func.func @transform_2(%arg0: i32, %arg1: i32) -> (i32, i32) {
    %c0_i32 = arith.constant 0 : i32
    %c0_i32_0 = arith.constant 0 : i32
    return %c0_i32, %arg1 : i32, i32
  }
  func.func @transform_3(%arg0: i32, %arg1: i32) -> (i32, i32) {
    %c0_i32 = arith.constant 0 : i32
    %c0_i32_0 = arith.constant 0 : i32
    return %c0_i32, %arg1 : i32, i32
  }
  func.func @transform_4(%arg0: i32, %arg1: i32) -> (i32, i32) {
    %c0_i32 = arith.constant 0 : i32
    return %arg0, %arg1 : i32, i32
  }
}

</mosaic_0001>

<bundles_post_ra>
// kernel: tpu_custom_call.1
= control target key start
LH: loop header
LB: loop body
LE: loop exit
PB: predicated region body
PF: predicated region fallthrough
CT: control target
= control target key end

     0   :  { %9 = vsyncpa [#allocation4], 0  ;;  %s851_s0 = inlined_call_operand.vmem [shape: f32[16,32], index: 0, kind: input, shape index: {}]   ;;  %s852_s1 = inlined_call_operand.vmem [shape: f32[32,4], index: 1, kind: input, shape index: {}]   ;;  %s853_s2 = inlined_call_operand.vmem [shape: f32[4,32], index: 2, kind: input, shape index: {}]   ;;  %s854_s3 = inlined_call_operand.vmem [shape: f32[1,32], index: 3, kind: input, shape index: {}]   ;;  %s855_s4 = inlined_call_operand.hbm [shape: f32[16,32], index: 4, kind: output, shape index: {}]  }
   0x1   :  { %11 = vsyncpa [#allocation4 + $0x1], 0  ;;  %s726_s15 = smov 0   ;;  %s728_s16 = smov 0  }
   0x2   :  { %s730_s17 = smov 0   ;;  %s732_s18 = smov 0  }
   0x3   :  { %s734_s19 = smov 0   ;;  %s736_s20 = smov 0  }
   0x4 LB: > { %s523_s21 = sadd.s32 4294967295, %s696_s20   ;;  %s524_s22 = sadd.s32 4294967294, %s696_s20   ;;  %s696_s20 = sphi %s736_s20, %s17_s20   ;;  %s692_s19 = sphi %s734_s19, %s862_s19   ;;  %s688_s18 = sphi %s732_s18, %s861_s18   ;;  %s684_s17 = sphi %s730_s17, %s860_s17   ;;  %s680_s16 = sphi %s728_s16, %s859_s16   ;;  %s676_s15 = sphi %s726_s15, %s858_s15  }
   0x5   : > { %s29_s23 = sadd.s32 1, %s692_s19  ;;  %s137_s24 = sadd.s32 1, %s684_s17 }
   0x6   : > { %p31_p0 = scmp.ge.s32.totalorder %s29_s23, 2  ;;  %p147_p1 = scmp.ne.s32.totalorder %s684_s17, %s680_s16 }
   0x7   : > { %p148_p2 = scmp.eq.s32.totalorder %s523_s21, 1  ;;  %p153_p3 = scmp.ne.s32.totalorder %s680_s16, %s676_s15 }
   0x8   : > { %s864_s23 = smov (%p31_p0, %s29_s23), 0  ;;  %p154_p5 = scmp.eq.s32.totalorder %s524_s22, 1 }
   0x9   : > { %p766_p4 = por %p148_p2, %p147_p1  ;;  %s132_s26 = ssub.s32 %s692_s19, %s864_s23 }
   0xa   : > { %p529_p6 = scmp.ge.s32.totalorder %s696_s20, 1  ;;  %p135_p7 = scmp.eq.s32.totalorder %s132_s26, 0 }
   0xb   : > { %p773_p8 = por %p154_p5, %p153_p3  ;;  %p195_p9 = scmp.lt.s32.totalorder %s696_s20, 3 }
   0xc   : > { %s779_s28 = scalar_select %p135_p7, %s684_s17, %s137_s24  }
   0xd   : > { %p196_p10 = pnand %p529_p6, %p195_p9 }
   0xe   : > { %p227_p11 = scmp.lt.s32.totalorder (!%p196_p10), %s688_s18, 1  ;;  %s224_s26 = sand.u32 (!%p196_p10), 1, %s680_s16  }
   0xf   : > { %199 = sbr.rel (%p196_p10) target bundleno = 440 (0x1b8), region = 36  ;;  %s530_s29 = sshll.u32 (!%p196_p10), %s224_s26, 3 }
  0x10   : > { %s537_s6 = sshll.u32 (!%p196_p10), %s688_s18, 7  ;;  %s414_s12 = scalar_lea.sflag (!%p196_p10), [#allocation4], %s224_s26 }
  0x11   : > { %s810_s11 = scalar_lea.hbm (!%p196_p10), %s855_s4, %s537_s6 }
  0x14   : > { %v246_v0 = vld [vmem:[%s852_s1 + $0x18] sm:$0xff]  ;;  %v698_v1 = vmov 0.0   ;;  %v245_v2 = vld [vmem:[%s852_s1 + $0x10] sm:$0xff]  ;;  %vm699_vm0 = vmmov 0   ;;  %s228_s7 = scalar_select %p227_p11, %s688_s18, 1  ;;  %v244_v3 = vld [vmem:[%s852_s1 + $0x8] sm:$0xff] }
  0x15   : > { %547 = vmatprep.subr.mxu0 %v698_v1  ;;  %555 = vmatprep.mubr.msk.f32.mxu0 %vm699_vm0, %v698_v1  ;;  %v243_v4 = vld [vmem:[%s852_s1] sm:$0xff]  ;;  %vm247_vm1 = vcmask 261120   ;;  %vm337_vm2 = vcmask 1043456   ;;  %vm322_vm3 = vcmask 31744   ;;  %s700_s18 = smov [#allocation3]  }
  0x16   : > { %548 = vmatpush3.msra.mxu0 %v246_v0  ;;  %558 = vmatprep.subr.mxu1 %v698_v1  ;;  %s531_s10 = sshll.u32 %s228_s7, 3  ;;  %v325_v6 = vld [vmem:[%s853_s2] sm:$0xf]  ;;  %s226_s7 = scalar_lea.vmem [#allocation3], %s530_s29 }
  0x17   : > { %549 = vmatprep.subr.mxu0 %v698_v1  ;;  %560 = vmatprep.mubr.msk.f32.mxu1 %vm699_vm0, %v698_v1  ;;  %s230_s21 = scalar_lea.vmem %s851_s0, %s531_s10  ;;  %v533_v11 = vld [vmem:[%s854_s3] ss:$0 sm:$0xff]  ;;  %s428_s8 = sshll.u32 %s226_s7, 4  ;;  %s429_s8 = int_to_ptr.vmem [resolvable:$true] %s428_s8 }
  0x18   : > { %550 = vmatpush3.msra.mxu0 %v245_v2  ;;  %v242_v5 = vld [vmem:[%s230_s21] sm:$0xff]  ;;  %559 = vmatpush3.msk.msra.mxu1 %vm337_vm2, %v325_v6  ;;  %s620_s13 = scalar_lea.vmem %s429_s8, 128  ;;  %s624_s14 = sshll.u32 %s700_s18, 4  ;;  %s625_s14 = int_to_ptr.vmem [resolvable:$false] %s624_s14 }
  0x19   : > { %551 = vmatprep.subr.mxu0 %v698_v1  ;;  %p621_p12 = scmp.ne.s32.totalorder %s429_s8, %s620_s13  ;;  %s626_s21 = scalar_lea.vmem %s625_s14, 256 }
  0x1a   : > { %552 = vmatpush3.msra.mxu0 %v244_v3  ;;  %p627_p1 = scmp.lt.s32.totalorder %s429_s8, %s625_s14  ;;  %p628_p2 = scmp.lt.s32.totalorder %s626_s21, %s620_s13 }
  0x1b   : > { %553 = vmatprep.subr.mxu0 %v698_v1  ;;  %p622_p13 = pnand %p621_p12, %p766_p4 }
  0x1c   : > { %554 = vmatpush3.msra.mxu0 %v243_v4  ;;  %p629_p3 = por %p628_p2, %p627_p1 }
  0x1d   : > { %556 = vmatmul.mubr.msk.f32.vlgmr.msra.gmra.mxu0 %vm247_vm1, %v242_v5  ;;  %p623_p0 = pneg %p622_p13 }
  0x1f   : > { %p630_p5 = pnand %p629_p3, %p623_p0 }
  0xdd   : > { %v317_v7 = vpop.f32.mrf.mxu0 }
  0xde   : > { %v321_v8 = vmul.f32 0.25, %v317_v7 }
  0xdf   : > { %v557_v9 = vpop.f32.mrf.mxu0 }
  0xe0   : > { %323 = vst.msk [vmem:[#allocation2] sm:$0xff] %vm322_vm3, %v321_v8 }
  0xe7   : > { %v324_v10 = vld [vmem:[#allocation2] sm:$0xff] }
  0xe8   : > { %561 = vmatmul.mubr.msk.f32.vlgmr.msra.gmra.mxu1 %vm322_vm3, %v324_v10 }
 0x1a8   : > { %v407_v12 = vpop.f32.mrf.mxu1 }
 0x1a9   : > { %v408_v13 = vadd.f32 %v533_v11, %v407_v12 }
 0x1aa   : > { %v562_v14 = vpop.f32.mrf.mxu1 }
 0x1ab   : > { %412 = vst.msk [vmem:[%s226_s7] sm:$0xff] %vm247_vm1, %v408_v13 }
 0x1ac   : > { %633 = shalt.err (!%p630_p5)
}
 0x1ad   : > { %s634_s22 = scalar_lea.hbm %s810_s11, 128  ;;  %s638_s29 = scalar_lea.hbm %s855_s4, 256 }
 0x1ae   : > { %p635_p6 = scmp.ne.s32.totalorder %s810_s11, %s634_s22  ;;  %p639_p10 = scmp.lt.s32.totalorder %s810_s11, %s855_s4 }
 0x1af   : > { %p640_p11 = scmp.lt.s32.totalorder %s638_s29, %s634_s22 }
 0x1b0   : > { %p636_p7 = pnand %p635_p6, %p766_p4 }
 0x1b1   : > { %p641_p12 = por %p640_p11, %p639_p10 }
 0x1b2   : > { %p637_p9 = pneg %p636_p7 }
 0x1b4   : > { %p642_p13 = pnand %p641_p12, %p637_p9 }
 0x1b6   : > { %645 = shalt.err (!%p642_p13)
}
 0x1b7   : > { %563 = dma.vmem_to_hbm [thread:$0]  (%p766_p4), %s429_s8, 128, %s810_s11, %s414_s12  }
 0x1b8 PF: > { %p569_p0 = scmp.ge.s32.totalorder %s696_s20, 2  ;;  %s440_s6 = sand.u32 1, %s676_s15  }
 0x1b9   : > { %s441_s7 = scalar_lea.sflag [#allocation4], %s440_s6 }
 0x1ba   : > { %p566_p1 = pnand %p569_p0, %p773_p8 }
 0x1bc   : > { %p567_p2 = pneg %p566_p1 }
 0x1be   : > { %671 = dma.done.wait (%p567_p2), %s441_s7, 128  }
 0x1bf   : > { %673 = vsyncadd (%p567_p2), %s441_s7, 4294967168  ;;  %s17_s20 = sadd.s32 1, %s696_s20   ;;  %s858_s15 = smov %s680_s16 }
 0x1c0   : > { %p14_p3 = scmp.ge.s32.totalorder %s17_s20, 4   ;;  %s859_s16 = smov %s684_s17 }
 0x1c1   : > { %s860_s17 = smov %s779_s28  ;;  %s861_s18 = smov %s692_s19 }
 0x1c2   : > { %s862_s19 = smov %s864_s23  ;;  %16 = sbr.rel (!%p14_p3) target bundleno = 4 (0x4), region = 81 }
 0x1c7   :  { %446 = vsyncpa [#allocation4], 1 }
 0x1c8   :  { %448 = vsyncpa [#allocation4 + $0x1], 1 }

</bundles_post_ra>
